<compile_context>
chip_gen: v6e
topology: v6e:2x2x1
jax: 0.10.0
libtpu: 0.0.40
codegen_flags: <defaults>
</compile_context>

<pallas_src>
import numpy as np
import jax
import jax.numpy as jnp
from jax.experimental import pallas as pl
from jax.experimental.pallas import tpu as pltpu


def _rel_pos_bias_kernel(idx_ref, table_t_ref, o_ref):
    """idx_ref: (1, P) int32 ; table_t_ref: (H, D) f32 ; o_ref: (H, P) f32."""
    idx = idx_ref[...]                                        # (1, P) int32
    D = table_t_ref.shape[1]
    P = idx.shape[1]

    # one_hot[d, p] = 1.0 where index_flat[p] == d   (broadcast over sublanes)
    d_iota = jax.lax.broadcasted_iota(jnp.int32, (D, P), 0)   # (D, P)
    onehot = (d_iota == idx).astype(table_t_ref.dtype)        # (D, P) 0/1

    # gather-as-matmul on the MXU: (H, D) @ (D, P) -> (H, P), f32 accumulate.
    o_ref[...] = jnp.dot(
        table_t_ref[...], onehot,
        preferred_element_type=jnp.float32,
        precision=jax.lax.Precision.HIGHEST,  # exact gather of f32 table values
    ).astype(o_ref.dtype)


def relative_position_bias_pallas(table, relative_position_index):
    """table: (num_relative_distance, num_heads) float32
       relative_position_index: (N, N) integer buffer (static)
       returns: (num_heads, N, N)  -- same as RelativePositionBias.forward()."""
    D, H = table.shape
    N = relative_position_index.shape[0]
    P = N * N

    idx_flat = jnp.asarray(np.asarray(relative_position_index).reshape(1, P),
                           dtype=jnp.int32)
    table_t = jnp.transpose(table)                            # (H, D)

    out_flat = pl.pallas_call(
        _rel_pos_bias_kernel,
        out_shape=jax.ShapeDtypeStruct((H, P), table.dtype),
        grid=(1,),                                            # one step: all in VMEM
        in_specs=[
            pl.BlockSpec((1, P), lambda i: (0, 0)),           # flattened index buffer
            pl.BlockSpec((H, D), lambda i: (0, 0)),           # table^T
        ],
        out_specs=pl.BlockSpec((H, P), lambda i: (0, 0)),     # lane-dense flat output
        compiler_params=pltpu.CompilerParams(
            dimension_semantics=("arbitrary",)),
    )(idx_flat, table_t)

    return out_flat.reshape(H, N, N)


def make_relative_position_index(window_size):
    """Replicates the buffer construction in RelativePositionBias.__init__."""
    Wh, Ww = window_size
    num_relative_distance = (2 * Wh - 1) * (2 * Ww - 1) + 3
    coords_h = np.arange(Wh)
    coords_w = np.arange(Ww)
    coords = np.stack(np.meshgrid(coords_h, coords_w, indexing="ij"))      # (2,Wh,Ww)
    coords_flatten = coords.reshape(2, -1)                                 # (2,Wh*Ww)
    relative_coords = coords_flatten[:, :, None] - coords_flatten[:, None, :]
    relative_coords = relative_coords.transpose(1, 2, 0).copy()
    relative_coords[:, :, 0] += Wh - 1
    relative_coords[:, :, 1] += Ww - 1
    relative_coords[:, :, 0] *= 2 * Ww - 1
    rpi = np.zeros((Wh * Ww + 1, Wh * Ww + 1), dtype=np.int64)
    rpi[1:, 1:] = relative_coords.sum(-1)
    rpi[0, 0:] = num_relative_distance - 3
    rpi[0:, 0] = num_relative_distance - 2
    rpi[0, 0] = num_relative_distance - 1
    return rpi, num_relative_distance


if __name__ == "__main__":
    # --- module config (small, consistent with the PyTorch module) ---
    num_heads = 4
    window_size = (4, 4)
    N = window_size[0] * window_size[1] + 1        # 17 tokens (incl. cls)

    rpi, num_rel_dist = make_relative_position_index(window_size)   # (17,17), 52

    # --- deterministic parameter init ---
    key = jax.random.PRNGKey(0)
    table = jax.random.normal(key, (num_rel_dist, num_heads), dtype=jnp.float32) * 0.02

    # --- run Pallas kernel ---
    out = relative_position_bias_pallas(table, rpi)
    out = jax.block_until_ready(out)

    # --- pure-JAX reference (mirrors PyTorch forward) ---
    idx = jnp.asarray(rpi.reshape(-1), dtype=jnp.int32)
    ref = table[idx].reshape(N, N, num_heads)
    ref = jnp.transpose(ref, (2, 0, 1))            # (H, N, N)

    assert out.shape == (num_heads, N, N)
    assert jnp.allclose(out, ref, atol=1e-4, rtol=1e-4), \
        "Pallas kernel mismatch vs reference"
    print("KERNEL_OK")
</pallas_src>

<mosaic_0001>
module attributes {stable_mosaic.version = 11 : i64} {
  func.func @_rel_pos_bias_kernel(%arg0: i32, %arg1: memref<1x289xi32, #tpu.memory_space<vmem>>, %arg2: memref<4x52xf32, #tpu.memory_space<vmem>>, %arg3: memref<4x289xf32, #tpu.memory_space<vmem>>) attributes {dimension_semantics = [#tpu.dimension_semantics<arbitrary>], iteration_bounds = array<i64: 1>, scalar_prefetch = 0 : i64, scratch_operands = 0 : i64, tpu.core_type = #tpu.core_type<tc>, window_params = [{pipeline_mode = #tpu.pipeline_mode<synchronous>, transform_indices = @transform_0, window_bounds = array<i64: 1, 289>}, {pipeline_mode = #tpu.pipeline_mode<synchronous>, transform_indices = @transform_1, window_bounds = array<i64: 4, 52>}, {pipeline_mode = #tpu.pipeline_mode<synchronous>, transform_indices = @transform_2, window_bounds = array<i64: 4, 289>}]} {
    %c0 = arith.constant 0 : index
    %c0_0 = arith.constant 0 : index
    %0 = vector.load %arg1[%c0, %c0_0] : memref<1x289xi32, #tpu.memory_space<vmem>>, vector<1x289xi32>
    %1 = tpu.iota {dimensions = array<i32: 0>} : vector<52x289xi32>
    %2 = vector.broadcast %0 : vector<1x289xi32> to vector<52x289xi32>
    %3 = arith.cmpi eq, %1, %2 : vector<52x289xi32>
    %4 = arith.extui %3 : vector<52x289xi1> to vector<52x289xi32>
    %5 = arith.sitofp %4 : vector<52x289xi32> to vector<52x289xf32>
    %c0_1 = arith.constant 0 : index
    %c0_2 = arith.constant 0 : index
    %6 = vector.load %arg2[%c0_1, %c0_2] : memref<4x52xf32, #tpu.memory_space<vmem>>, vector<4x52xf32>
    %cst = arith.constant dense<0.000000e+00> : vector<4x289xf32>
    %7 = tpu.matmul %6, %5, %cst {dimension_numbers = #tpu.dot_dimension_numbers<[1], [0], [0], [1], [0, 0, 1, 1], [], []>, precision = #tpu.contract_precision<fp32>} : vector<4x52xf32>, vector<52x289xf32>, vector<4x289xf32> -> vector<4x289xf32>
    %c0_3 = arith.constant 0 : index
    %c0_4 = arith.constant 0 : index
    %8 = vector.load %arg3[%c0_3, %c0_4] : memref<4x289xf32, #tpu.memory_space<vmem>>, vector<4x289xf32>
    tpu.vector_store %arg3[%c0_3, %c0_4], %7 {strides = array<i32>} : memref<4x289xf32, #tpu.memory_space<vmem>>, vector<4x289xf32>,
    return
  }
  func.func @transform_0(%arg0: i32) -> (i32, i32) {
    %c0_i32 = arith.constant 0 : i32
    %c0_i32_0 = arith.constant 0 : i32
    %c0_i32_1 = arith.constant 0 : i32
    return %c0_i32, %c0_i32_0 : i32, i32
  }
  func.func @transform_1(%arg0: i32) -> (i32, i32) {
    %c0_i32 = arith.constant 0 : i32
    %c0_i32_0 = arith.constant 0 : i32
    %c0_i32_1 = arith.constant 0 : i32
    return %c0_i32, %c0_i32_0 : i32, i32
  }
  func.func @transform_2(%arg0: i32) -> (i32, i32) {
    %c0_i32 = arith.constant 0 : i32
    %c0_i32_0 = arith.constant 0 : i32
    %c0_i32_1 = arith.constant 0 : i32
    return %c0_i32, %c0_i32_0 : i32, i32
  }
}

</mosaic_0001>

<bundles_post_ra>
// kernel: tpu_custom_call.1
= control target key start
LH: loop header
LB: loop body
LE: loop exit
PB: predicated region body
PF: predicated region fallthrough
CT: control target
= control target key end

     0   :  { %7 = vsyncpa [#allocation3], 0  ;;  %s2313_s0 = inlined_call_operand.hbm [shape: s32[1,289], index: 0, kind: input, shape index: {}]   ;;  %s2314_s1 = inlined_call_operand.hbm [shape: f32[4,52], index: 1, kind: input, shape index: {}]   ;;  %s2315_s2 = inlined_call_operand.hbm [shape: f32[4,289], index: 2, kind: output, shape index: {}]  }
   0x1   :  { %8 = vsyncpa [#allocation6], 0 }
   0x2   :  { %9 = vsyncpa [#allocation4], 0  ;;  %s1609_s9 = smov [#allocation2]   ;;  %s1610_s11 = smov [#allocation5]  }
   0x3   :  { %s16_s10 = sshll.u32 %s1609_s9, 4  ;;  %s26_s12 = sshll.u32 %s1610_s11, 4  ;;  %s17_s10 = int_to_ptr.vmem [resolvable:$true] %s16_s10  ;;  %s27_s12 = int_to_ptr.vmem [resolvable:$true] %s26_s12 }
   0x4   :  { %s1551_s13 = scalar_lea.vmem %s17_s10, 48  ;;  %s1555_s14 = scalar_lea.vmem %s17_s10, 64 }
   0x5   :  { %p1552_p0 = scmp.ne.s32.totalorder %s17_s10, %s1551_s13  ;;  %p1556_p1 = scmp.lt.s32.totalorder %s17_s10, %s17_s10 }
   0x6   :  { %p1557_p2 = scmp.lt.s32.totalorder %s1555_s14, %s1551_s13 }
   0x8   :  { %p1558_p3 = por %p1557_p2, %p1556_p1 }
   0xa   :  { %p1559_p4 = pnand %p1558_p3, %p1552_p0 }
   0xc   :  { %1562 = shalt.err (!%p1559_p4)
}
   0xd   :  { %19 = dma.hbm_to_vmem [thread:$0]  %s2313_s0, 48, %s17_s10, [#allocation3]  }
   0xe   :  { %s1571_s17 = scalar_lea.vmem %s27_s12, 64  ;;  %p1576_p6 = scmp.lt.s32.totalorder %s27_s12, %s27_s12 }
   0xf   :  { %p1572_p5 = scmp.ne.s32.totalorder %s27_s12, %s1571_s17  ;;  %p1577_p7 = scmp.lt.s32.totalorder %s1571_s17, %s1571_s17 }
  0x11   :  { %p1578_p8 = por %p1577_p7, %p1576_p6 }
  0x13   :  { %p1579_p9 = pnand %p1578_p8, %p1572_p5 }
  0x15   :  { %1582 = shalt.err (!%p1579_p9)
}
  0x16   :  { %29 = dma.hbm_to_vmem [thread:$0]  %s2314_s1, 64, %s27_s12, [#allocation6]  }
  0x17   :  { %1603 = dma.done.wait [#allocation3], 48  }
  0x18   :  { %1604 = vsyncadd [#allocation3], 4294967248 }
  0x19   :  { %1605 = dma.done.wait [#allocation6], 64  }
  0x1a   :  { %1606 = vsyncadd [#allocation6], 4294967232  ;;  %v37_v0 = vlaneseq  ;;  %v1611_v1 = vmov 0.0   ;;  %vm121_vm0 = vcmask 424960   ;;  %v1648_v7 = vld [vmem:[#allocation2] sm:$0x7] }
  0x1b   :  { %213 = vmatprep.mubr.f32.mxu0 %v1611_v1  ;;  %359 = vmatprep.mubr.f32.mxu1 %v1611_v1  ;;  %vm125_vm1 = vcmask 1043456   ;;  %v120_v8 = vld [vmem:[#allocation5] sm:$0xf]  ;;  %v1612_v25 = vmov 1.0   ;;  %s1614_s0 = smov [#allocation7]  }
  0x1c   :  { %v1638_v2 = vshrl.u32 %v37_v0, 7  ;;  %v1659_v12 = vsel %vm121_vm0, %v120_v8, 0  ;;  %s1293_s1 = sshll.u32 %s1614_s0, 4  ;;  %s1294_s1 = int_to_ptr.vmem [resolvable:$true] %s1293_s1 }
  0x1d   :  { %v1671_v16 = vand.u32 4294901760, %v1659_v12  ;;  %s1583_s20 = scalar_lea.vmem %s1294_s1, 192  ;;  %p1588_p11 = scmp.lt.s32.totalorder %s1294_s1, %s1294_s1 }
  0x1e   :  { %v51_v3 = vsub.s32 1, %v1638_v2  ;;  %v47_v4 = vsub.s32 0, %v1638_v2  ;;  %v1643_v5 = vadd.s32 48, %v1638_v2  ;;  %v1646_v6 = vadd.s32 40, %v1638_v2  ;;  %p1584_p10 = scmp.ne.s32.totalorder %s1294_s1, %s1583_s20  ;;  %p1589_p12 = scmp.lt.s32.totalorder %s1583_s20, %s1583_s20 }
  0x1f   :  { %v1657_v11 = vadd.s32 32, %v1638_v2  ;;  %v1662_v13 = vadd.s32 24, %v1638_v2  ;;  %v1665_v14 = vadd.s32 16, %v1638_v2  ;;  %v1668_v15 = vadd.s32 8, %v1638_v2 }
  0x20   :  { %v1651_v9 = vrot.slane %v1648_v7, %v51_v3  ;;  %v1654_v10 = vrot.slane %v1648_v7, %v47_v4  ;;  %v1858_v62 = vsub.f32 %v1659_v12, %v1671_v16  ;;  %p1590_p13 = por %p1589_p12, %p1588_p11 }
  0x22   :  { %vm76_vm2 = vcmp.eq.s32.totalorder %v1643_v5, %v1651_v9  ;;  %vm75_vm3 = vcmp.eq.s32.totalorder %v1643_v5, %v1654_v10  ;;  %vm73_vm4 = vcmp.eq.s32.totalorder %v1646_v6, %v1651_v9  ;;  %vm72_vm5 = vcmp.eq.s32.totalorder %v1646_v6, %v1654_v10  ;;  %p1591_p0 = pnand %p1590_p13, %p1584_p10 }
  0x23   :  { %v1682_v17 = vsel %vm76_vm2, 1.0, %v1611_v1  ;;  %v1685_v18 = vsel %vm75_vm3, 1.0, %v1611_v1  ;;  %v1319_v19 = vsel %vm73_vm4, 1.0, %v1611_v1  ;;  %v1318_v20 = vsel %vm72_vm5, 1.0, %v1611_v1 }
  0x24   :  { %1324 = vmatprep.subr.msk.mxu0 %vm125_vm1, %v1682_v17  ;;  %v1697_v21 = vsub.f32 %v1319_v19, %v1319_v19  ;;  %v1699_v22 = vsub.f32 %v1318_v20, %v1318_v20  ;;  %vm70_vm6 = vcmp.eq.s32.totalorder %v1657_v11, %v1651_v9  ;;  %vm69_vm7 = vcmp.eq.s32.totalorder %v1657_v11, %v1654_v10 }
  0x25   :  { %1325 = vmatpush1.msk.msra.mxu0 %vm125_vm1, %v1685_v18  ;;  %v1316_v23 = vsel %vm70_vm6, 1.0, %v1611_v1  ;;  %v1315_v24 = vsel %vm69_vm7, 1.0, %v1611_v1  ;;  %vm67_vm8 = vcmp.eq.s32.totalorder %v1662_v13, %v1651_v9  ;;  %vm66_vm9 = vcmp.eq.s32.totalorder %v1662_v13, %v1654_v10 }
  0x26   :  { %1326 = vmatprep.subr.msk.mxu0 %vm73_vm4, %v1612_v25  ;;  %v1723_v26 = vsub.f32 %v1316_v23, %v1316_v23  ;;  %v1725_v27 = vsub.f32 %v1315_v24, %v1315_v24  ;;  %v1313_v28 = vsel %vm67_vm8, 1.0, %v1611_v1  ;;  %v1312_v29 = vsel %vm66_vm9, 1.0, %v1611_v1 }
  0x27   :  { %1327 = vmatpush1.msk.msra.mxu0 %vm72_vm5, %v1612_v25  ;;  %v1739_v30 = vsub.f32 %v1313_v28, %v1313_v28  ;;  %v1741_v31 = vsub.f32 %v1312_v29, %v1312_v29  ;;  %vm64_vm10 = vcmp.eq.s32.totalorder %v1665_v14, %v1651_v9  ;;  %vm63_vm11 = vcmp.eq.s32.totalorder %v1665_v14, %v1654_v10 }
  0x28   :  { %1328 = vmatprep.subr.msk.mxu0 %vm70_vm6, %v1612_v25  ;;  %v1310_v32 = vsel %vm64_vm10, 1.0, %v1611_v1  ;;  %v1309_v33 = vsel %vm63_vm11, 1.0, %v1611_v1  ;;  %v130_v34 = vsel %vm125_vm1, %v1682_v17, 0  ;;  %vm61_vm12 = vcmp.eq.s32.totalorder %v1668_v15, %v1651_v9 }
  0x29   :  { %1329 = vmatpush1.msk.msra.mxu0 %vm69_vm7, %v1612_v25  ;;  %v1767_v35 = vsub.f32 %v1310_v32, %v1310_v32  ;;  %v1769_v36 = vsub.f32 %v1309_v33, %v1309_v33  ;;  %v1771_v37 = vsub.f32 %v130_v34, %v130_v34  ;;  %v1307_v38 = vsel %vm61_vm12, 1.0, %v1611_v1 }
  0x2a   :  { %1330 = vmatprep.subr.msk.mxu0 %vm67_vm8, %v1612_v25  ;;  %v1781_v39 = vsub.f32 %v1307_v38, %v1307_v38  ;;  %v127_v40 = vsel %vm125_vm1, %v1685_v18, 0  ;;  %vm60_vm13 = vcmp.eq.s32.totalorder %v1668_v15, %v1654_v10  ;;  %v257_v41 = vand.u32 4294901760, %v1697_v21 }
  0x2b   :  { %1331 = vmatpush1.msk.msra.mxu0 %vm66_vm9, %v1612_v25  ;;  %v245_v42 = vand.u32 4294901760, %v1771_v37  ;;  %v1793_v43 = vsub.f32 %v127_v40, %v127_v40  ;;  %v1306_v44 = vsel %vm60_vm13, 1.0, %v1611_v1  ;;  %vm58_vm14 = vcmp.eq.s32.totalorder %v1638_v2, %v1651_v9 }
  0x2c   :  { %1332 = vmatprep.subr.msk.mxu0 %vm64_vm10, %v1612_v25  ;;  %v1805_v45 = vsub.f32 %v1306_v44, %v1306_v44  ;;  %v258_v46 = vsub.f32 %v1697_v21, %v257_v41  ;;  %v1304_v47 = vsel %vm58_vm14, 1.0, %v1611_v1  ;;  %v263_v48 = vand.u32 4294901760, %v1699_v22 }
  0x2d   :  { %1333 = vmatpush1.msk.msra.mxu0 %vm63_vm11, %v1612_v25  ;;  %v246_v49 = vsub.f32 %v1771_v37, %v245_v42  ;;  %v251_v50 = vand.u32 4294901760, %v1793_v43  ;;  %v1823_v51 = vsub.f32 %v1304_v47, %v1304_v47  ;;  %vm57_vm15 = vcmp.eq.s32.totalorder %v1638_v2, %v1654_v10 }
  0x2e   :  { %1334 = vmatprep.subr.msk.mxu0 %vm61_vm12, %v1612_v25  ;;  %v259_v52 = vand.u32 4294901760, %v258_v46  ;;  %v264_v53 = vsub.f32 %v1699_v22, %v263_v48  ;;  %v1303_v54 = vsel %vm57_vm15, 1.0, %v1611_v1  ;;  %v269_v55 = vand.u32 4294901760, %v1723_v26 }
  0x2f   :  { %v247_v56 = vand.u32 4294901760, %v246_v49  ;;  %v252_v57 = vsub.f32 %v1793_v43, %v251_v50  ;;  %1335 = vmatpush1.msk.msra.mxu0 %vm60_vm13, %v1612_v25  ;;  %v1846_v58 = vsub.f32 %v1303_v54, %v1303_v54  ;;  %v275_v59 = vand.u32 4294901760, %v1725_v27 }
  0x30   :  { %1336 = vmatprep.subr.msk.mxu0 %vm58_vm14, %v1612_v25  ;;  %v265_v60 = vand.u32 4294901760, %v264_v53  ;;  %v270_v61 = vsub.f32 %v1723_v26, %v269_v55  ;;  %v281_v63 = vand.u32 4294901760, %v1739_v30  ;;  %v287_v4 = vand.u32 4294901760, %v1741_v31 }
  0x31   :  { %248 = vmatprep.subr.mxu1 %v247_v56  ;;  %v253_v0 = vand.u32 4294901760, %v252_v57  ;;  %1337 = vmatpush1.msk.msra.mxu0 %vm57_vm15, %v1612_v25  ;;  %v276_v3 = vsub.f32 %v1725_v27, %v275_v59  ;;  %v293_v8 = vand.u32 4294901760, %v1767_v35  ;;  %v1872_v12 = vand.u32 4294901760, %v1858_v62 }
  0x32   :  { %v271_v19 = vand.u32 4294901760, %v270_v61  ;;  %387 = vmatprep.subr.mxu0 %v1771_v37  ;;  %v282_v20 = vsub.f32 %v1739_v30, %v281_v63  ;;  %v299_v23 = vand.u32 4294901760, %v1769_v36  ;;  %v288_v28 = vsub.f32 %v1741_v31, %v287_v4 }
  0x33   :  { %254 = vmatpush1.msra.mxu1 %v253_v0  ;;  %v277_v24 = vand.u32 4294901760, %v276_v3  ;;  %v294_v29 = vsub.f32 %v1767_v35, %v293_v8  ;;  %v305_v32 = vand.u32 4294901760, %v1781_v39  ;;  %v217_v33 = vsub.f32 %v1858_v62, %v1872_v12 }
  0x34   :  { %260 = vmatprep.subr.mxu1 %v259_v52  ;;  %v283_v34 = vand.u32 4294901760, %v282_v20  ;;  %v300_v38 = vsub.f32 %v1769_v36, %v299_v23  ;;  %v311_v40 = vand.u32 4294901760, %v1805_v45  ;;  %v289_v44 = vand.u32 4294901760, %v288_v28 }
  0x35   :  { %266 = vmatpush1.msra.mxu1 %v265_v60  ;;  %v306_v46 = vsub.f32 %v1781_v39, %v305_v32  ;;  %v317_v47 = vand.u32 4294901760, %v1823_v51  ;;  %v1895_v49 = vand.u32 4294901760, %v217_v33  ;;  %v295_v52 = vand.u32 4294901760, %v294_v29 }
  0x36   :  { %272 = vmatprep.subr.mxu1 %v271_v19  ;;  %v312_v53 = vsub.f32 %v1805_v45, %v311_v40  ;;  %v323_v54 = vand.u32 4294901760, %v1846_v58  ;;  %v301_v56 = vand.u32 4294901760, %v300_v38  ;;  %v55_v20 = vsub.s32 2, %v1638_v2 }
  0x37   :  { %278 = vmatpush1.msra.mxu1 %v277_v24  ;;  %v318_v57 = vsub.f32 %v1823_v51, %v317_v47  ;;  %219 = vmatmul.mubr.f32.vlgmr.msra.gmra.mxu0 %v1895_v49  ;;  %v307_v60 = vand.u32 4294901760, %v306_v46 }
  0x38   :  { %284 = vmatprep.subr.mxu1 %v283_v34  ;;  %v324_v61 = vsub.f32 %v1846_v58, %v323_v54  ;;  %390 = vmatpush1.msra.mxu0 %v1793_v43  ;;  %v313_v0 = vand.u32 4294901760, %v312_v53  ;;  %v1937_v24 = vrot.slane %v1648_v7, %v55_v20 }
  0x39   :  { %290 = vmatpush1.msra.mxu1 %v289_v44  ;;  %393 = vmatprep.subr.mxu0 %v1697_v21  ;;  %v319_v3 = vand.u32 4294901760, %v318_v57 }
  0x3a   :  { %296 = vmatprep.subr.mxu1 %v295_v52  ;;  %396 = vmatpush1.msra.mxu0 %v1699_v22  ;;  %v325_v19 = vand.u32 4294901760, %v324_v61  ;;  %vm77_vm0 = vcmp.eq.s32.totalorder %v1643_v5, %v1937_v24  ;;  %vm74_vm2 = vcmp.eq.s32.totalorder %v1646_v6, %v1937_v24  ;;  %vm71_vm3 = vcmp.eq.s32.totalorder %v1657_v11, %v1937_v24 }
  0x3b   :  { %302 = vmatpush1.msra.mxu1 %v301_v56  ;;  %399 = vmatprep.subr.mxu0 %v1723_v26  ;;  %v1983_v5 = vsel %vm77_vm0, 1.0, %v1611_v1  ;;  %v1320_v21 = vsel %vm74_vm2, 1.0, %v1611_v1  ;;  %vm68_vm0 = vcmp.eq.s32.totalorder %v1662_v13, %v1937_v24 }
  0x3c   :  { %308 = vmatprep.subr.mxu1 %v307_v60  ;;  %402 = vmatpush1.msra.mxu0 %v1725_v27  ;;  %v133_v7 = vsel %vm125_vm1, %v1983_v5, 0  ;;  %v1314_v27 = vsel %vm68_vm0, 1.0, %v1611_v1 }
  0x3d   :  { %314 = vmatpush1.msra.mxu1 %v313_v0  ;;  %405 = vmatprep.subr.mxu0 %v1739_v30  ;;  %v2023_v22 = vsub.f32 %v133_v7, %v133_v7 }
  0x3e   :  { %320 = vmatprep.subr.mxu1 %v319_v3  ;;  %408 = vmatpush1.msra.mxu0 %v1741_v31 }
  0x3f   :  { %326 = vmatpush1.msra.mxu1 %v325_v19  ;;  %411 = vmatprep.subr.mxu0 %v1767_v35  ;;  %v859_v30 = vand.u32 4294901760, %v2023_v22 }
  0x40   :  { %361 = vmatmul.mubr.f32.vlgmr.msra.gmra.mxu1 %v1671_v16  ;;  %414 = vmatpush1.msra.mxu0 %v1769_v36  ;;  %v2085_v36 = vsub.f32 %v1314_v27, %v1314_v27 }
  0x41   :  { %1338 = vmatprep.subr.msk.mxu1 %vm125_vm1, %v1682_v17  ;;  %417 = vmatprep.subr.mxu0 %v1781_v39  ;;  %v860_v37 = vsub.f32 %v2023_v22, %v859_v30 }
  0x42   :  { %1339 = vmatpush1.msk.msra.mxu1 %vm125_vm1, %v1685_v18  ;;  %420 = vmatpush1.msra.mxu0 %v1805_v45 }
  0x43   :  { %1340 = vmatprep.subr.msk.mxu1 %vm73_vm4, %v1612_v25  ;;  %423 = vmatprep.subr.mxu0 %v1823_v51  ;;  %v861_v51 = vand.u32 4294901760, %v860_v37 }
  0x44   :  { %1341 = vmatpush1.msk.msra.mxu1 %vm72_vm5, %v1612_v25  ;;  %426 = vmatpush1.msra.mxu0 %v1846_v58 }
  0x45   :  { %459 = vmatprep.mubr.f32.mxu0 %v1611_v1  ;;  %1342 = vmatprep.subr.msk.mxu1 %vm70_vm6, %v1612_v25 }
  0x46   :  { %462 = vmatmul.mubr.f32.vlgmr.msra.gmra.mxu0 %v1858_v62  ;;  %1343 = vmatpush1.msk.msra.mxu1 %vm69_vm7, %v1612_v25 }
  0x47   :  { %577 = vmatprep.subr.mxu0 %v245_v42  ;;  %1344 = vmatprep.subr.msk.mxu1 %vm67_vm8, %v1612_v25 }
  0x48   :  { %581 = vmatpush1.msra.mxu0 %v251_v50  ;;  %1345 = vmatpush1.msk.msra.mxu1 %vm66_vm9, %v1612_v25  ;;  %v880_v50 = vand.u32 4294901760, %v2085_v36 }
  0x49   :  { %585 = vmatprep.subr.mxu0 %v257_v41  ;;  %1346 = vmatprep.subr.msk.mxu1 %vm64_vm10, %v1612_v25 }
  0x4a   :  { %589 = vmatpush1.msra.mxu0 %v263_v48  ;;  %1347 = vmatpush1.msk.msra.mxu1 %vm63_vm11, %v1612_v25  ;;  %v881_v10 = vsub.f32 %v2085_v36, %v880_v50 }
  0x4b   :  { %593 = vmatprep.subr.mxu0 %v269_v55  ;;  %1348 = vmatprep.subr.msk.mxu1 %vm61_vm12, %v1612_v25 }
  0x4c   :  { %597 = vmatpush1.msra.mxu0 %v275_v59  ;;  %1349 = vmatpush1.msk.msra.mxu1 %vm60_vm13, %v1612_v25  ;;  %v882_v28 = vand.u32 4294901760, %v881_v10 }
  0x4d   :  { %601 = vmatprep.subr.mxu0 %v281_v63  ;;  %1350 = vmatprep.subr.msk.mxu1 %vm58_vm14, %v1612_v25 }
  0x4e   :  { %605 = vmatpush1.msra.mxu0 %v287_v4  ;;  %1351 = vmatpush1.msk.msra.mxu1 %vm57_vm15, %v1612_v25 }
  0x4f   :  { %546 = vmatprep.mubr.f32.mxu1 %v1611_v1  ;;  %609 = vmatprep.subr.mxu0 %v293_v8 }
  0x50   :  { %550 = vmatmul.mubr.f32.vlgmr.msra.gmra.mxu1 %v1872_v12  ;;  %613 = vmatpush1.msra.mxu0 %v299_v23 }
  0x51   :  { %1352 = vmatprep.subr.msk.mxu1 %vm125_vm1, %v1682_v17  ;;  %617 = vmatprep.subr.mxu0 %v305_v32  ;;  %v1317_v17 = vsel %vm71_vm3, 1.0, %v1611_v1 }
  0x52   :  { %1353 = vmatpush1.msk.msra.mxu1 %vm125_vm1, %v1685_v18  ;;  %621 = vmatpush1.msra.mxu0 %v311_v40  ;;  %v2043_v18 = vsub.f32 %v1320_v21, %v1320_v21  ;;  %v2055_v26 = vsub.f32 %v1317_v17, %v1317_v17 }
  0x53   :  { %1354 = vmatprep.subr.msk.mxu1 %vm73_vm4, %v1612_v25  ;;  %625 = vmatprep.subr.mxu0 %v317_v47  ;;  %vm65_vm4 = vcmp.eq.s32.totalorder %v1665_v14, %v1937_v24 }
  0x54   :  { %1355 = vmatpush1.msk.msra.mxu1 %vm72_vm5, %v1612_v25  ;;  %629 = vmatpush1.msra.mxu0 %v323_v54  ;;  %vm62_vm5 = vcmp.eq.s32.totalorder %v1668_v15, %v1937_v24  ;;  %v1311_v31 = vsel %vm65_vm4, 1.0, %v1611_v1  ;;  %v866_v35 = vand.u32 4294901760, %v2043_v18  ;;  %v873_v41 = vand.u32 4294901760, %v2055_v26 }
  0x55   :  { %662 = vmatprep.mubr.f32.mxu0 %v1611_v1  ;;  %1356 = vmatprep.subr.msk.mxu1 %vm70_vm6, %v1612_v25  ;;  %vm59_vm6 = vcmp.eq.s32.totalorder %v1638_v2, %v1937_v24  ;;  %v1308_v39 = vsel %vm62_vm5, 1.0, %v1611_v1  ;;  %v2110_v42 = vsub.f32 %v1311_v31, %v1311_v31 }
  0x56   :  { %664 = vmatmul.mubr.f32.vlgmr.msra.gmra.mxu0 %v1671_v16  ;;  %1357 = vmatpush1.msk.msra.mxu1 %vm69_vm7, %v1612_v25  ;;  %v867_v43 = vsub.f32 %v2043_v18, %v866_v35  ;;  %v1305_v45 = vsel %vm59_vm6, 1.0, %v1611_v1  ;;  %v2132_v48 = vsub.f32 %v1308_v39, %v1308_v39  ;;  %v874_v55 = vsub.f32 %v2055_v26, %v873_v41 }
  0x57   :  { %1435 = vmatprep.subr.mxu0 %v1611_v1  ;;  %1358 = vmatprep.subr.msk.mxu1 %vm67_vm8, %v1612_v25  ;;  %v2151_v58 = vsub.f32 %v1305_v45, %v1305_v45  ;;  %v887_v9 = vand.u32 4294901760, %v2110_v42  ;;  %vm1613_vm7 = vmmov 0  }
  0x58   :  { %1436 = vmatpush3.msk.msra.mxu0 %vm125_vm1, %v1983_v5  ;;  %1359 = vmatpush1.msk.msra.mxu1 %vm66_vm9, %v1612_v25  ;;  %v868_v59 = vand.u32 4294901760, %v867_v43  ;;  %v894_v63 = vand.u32 4294901760, %v2132_v48  ;;  %v875_v4 = vand.u32 4294901760, %v874_v55 }
  0x59   :  { %1437 = vmatprep.subr.mxu0 %v1611_v1  ;;  %1360 = vmatprep.subr.msk.mxu1 %vm64_vm10, %v1612_v25  ;;  %v888_v8 = vsub.f32 %v2110_v42, %v887_v9  ;;  %v901_v23 = vand.u32 4294901760, %v2151_v58 }
  0x5a   :  { %1438 = vmatpush3.msk.msra.mxu0 %vm74_vm2, %v1612_v25  ;;  %1361 = vmatpush1.msk.msra.mxu1 %vm63_vm11, %v1612_v25  ;;  %v895_v29 = vsub.f32 %v2132_v48, %v894_v63 }
  0x5b   :  { %1439 = vmatprep.subr.mxu0 %v1611_v1  ;;  %1362 = vmatprep.subr.msk.mxu1 %vm61_vm12, %v1612_v25  ;;  %v889_v32 = vand.u32 4294901760, %v888_v8  ;;  %v902_v33 = vsub.f32 %v2151_v58, %v901_v23 }
  0x5c   :  { %1440 = vmatpush3.msk.msra.mxu0 %vm71_vm3, %v1612_v25  ;;  %1363 = vmatpush1.msk.msra.mxu1 %vm60_vm13, %v1612_v25  ;;  %v896_v34 = vand.u32 4294901760, %v895_v29 }
  0x5d   :  { %1441 = vmatprep.subr.mxu0 %v1611_v1  ;;  %1364 = vmatprep.subr.msk.mxu1 %vm58_vm14, %v1612_v25  ;;  %v903_v38 = vand.u32 4294901760, %v902_v33 }
  0x5e   :  { %1442 = vmatpush3.msk.msra.mxu0 %vm68_vm0, %v1612_v25  ;;  %1365 = vmatpush1.msk.msra.mxu1 %vm57_vm15, %v1612_v25 }
  0x5f   :  { %748 = vmatprep.mubr.f32.mxu1 %v1611_v1  ;;  %1443 = vmatprep.subr.mxu0 %v1611_v1 }
  0x60   :  { %750 = vmatmul.mubr.f32.vlgmr.msra.gmra.mxu1 %v1671_v16  ;;  %1444 = vmatpush3.msk.msra.mxu0 %vm65_vm4, %v1612_v25 }
  0x61   :  { %1452 = vmatprep.subr.mxu1 %v1611_v1  ;;  %1445 = vmatprep.subr.mxu0 %v1611_v1 }
  0x62   :  { %1453 = vmatpush3.msra.mxu1 %v861_v51  ;;  %1446 = vmatpush3.msk.msra.mxu0 %vm62_vm5, %v1612_v25 }
  0x63   :  { %1454 = vmatprep.subr.mxu1 %v1611_v1  ;;  %1447 = vmatprep.subr.mxu0 %v1611_v1 }
  0x64   :  { %1455 = vmatpush3.msra.mxu1 %v868_v59  ;;  %1448 = vmatpush3.msk.msra.mxu0 %vm59_vm6, %v1612_v25 }
  0x65   :  { %1456 = vmatprep.subr.mxu1 %v1611_v1  ;;  %1449 = vmatprep.mubr.msk.f32.mxu0 %vm1613_vm7, %v1611_v1 }
  0x66   :  { %1457 = vmatpush3.msra.mxu1 %v875_v4  ;;  %1469 = vmatprep.subr.mxu0 %v1611_v1 }
  0x67   :  { %1450 = vmatmul.mubr.f32.vlgmr.msra.gmra.mxu0 %v1895_v49  ;;  %1458 = vmatprep.subr.mxu1 %v1611_v1 }
  0x68   :  { %1470 = vmatpush3.msra.mxu0 %v2023_v22  ;;  %1459 = vmatpush3.msra.mxu1 %v882_v28 }
  0x69   :  { %1471 = vmatprep.subr.mxu0 %v1611_v1  ;;  %1460 = vmatprep.subr.mxu1 %v1611_v1 }
  0x6a   :  { %1472 = vmatpush3.msra.mxu0 %v2043_v18  ;;  %1461 = vmatpush3.msra.mxu1 %v889_v32 }
  0x6b   :  { %1473 = vmatprep.subr.mxu0 %v1611_v1  ;;  %1462 = vmatprep.subr.mxu1 %v1611_v1 }
  0x6c   :  { %1474 = vmatpush3.msra.mxu0 %v2055_v26  ;;  %1463 = vmatpush3.msra.mxu1 %v896_v34 }
  0x6d   :  { %1475 = vmatprep.subr.mxu0 %v1611_v1  ;;  %1464 = vmatprep.subr.mxu1 %v1611_v1 }
  0x6e   :  { %1476 = vmatpush3.msra.mxu0 %v2085_v36  ;;  %1465 = vmatpush3.msra.mxu1 %v903_v38 }
  0x6f   :  { %1466 = vmatprep.mubr.msk.f32.mxu1 %vm1613_vm7, %v1611_v1  ;;  %1477 = vmatprep.subr.mxu0 %v1611_v1 }
  0x70   :  { %1467 = vmatmul.mubr.f32.vlgmr.msra.gmra.mxu1 %v1671_v16  ;;  %1478 = vmatpush3.msra.mxu0 %v2110_v42 }
  0x71   :  { %1486 = vmatprep.subr.mxu1 %v1611_v1  ;;  %1479 = vmatprep.subr.mxu0 %v1611_v1 }
  0x72   :  { %1487 = vmatpush3.msk.msra.mxu1 %vm125_vm1, %v1983_v5  ;;  %1480 = vmatpush3.msra.mxu0 %v2132_v48 }
  0x73   :  { %1488 = vmatprep.subr.mxu1 %v1611_v1  ;;  %1481 = vmatprep.subr.mxu0 %v1611_v1 }
  0x74   :  { %1489 = vmatpush3.msk.msra.mxu1 %vm74_vm2, %v1612_v25  ;;  %1482 = vmatpush3.msra.mxu0 %v2151_v58 }
  0x75   :  { %1483 = vmatprep.mubr.msk.f32.mxu0 %vm1613_vm7, %v1611_v1  ;;  %1490 = vmatprep.subr.mxu1 %v1611_v1 }
  0x76   :  { %1484 = vmatmul.mubr.f32.vlgmr.msra.gmra.mxu0 %v1858_v62  ;;  %1491 = vmatpush3.msk.msra.mxu1 %vm71_vm3, %v1612_v25 }
  0x77   :  { %1503 = vmatprep.subr.mxu0 %v1611_v1  ;;  %1492 = vmatprep.subr.mxu1 %v1611_v1 }
  0x78   :  { %1504 = vmatpush3.msra.mxu0 %v859_v30  ;;  %1493 = vmatpush3.msk.msra.mxu1 %vm68_vm0, %v1612_v25 }
  0x79   :  { %1505 = vmatprep.subr.mxu0 %v1611_v1  ;;  %1494 = vmatprep.subr.mxu1 %v1611_v1 }
  0x7a   :  { %1506 = vmatpush3.msra.mxu0 %v866_v35  ;;  %1495 = vmatpush3.msk.msra.mxu1 %vm65_vm4, %v1612_v25 }
  0x7b   :  { %1507 = vmatprep.subr.mxu0 %v1611_v1  ;;  %1496 = vmatprep.subr.mxu1 %v1611_v1 }
  0x7c   :  { %1508 = vmatpush3.msra.mxu0 %v873_v41  ;;  %1497 = vmatpush3.msk.msra.mxu1 %vm62_vm5, %v1612_v25 }
  0x7d   :  { %1509 = vmatprep.subr.mxu0 %v1611_v1  ;;  %1498 = vmatprep.subr.mxu1 %v1611_v1 }
  0x7e   :  { %1510 = vmatpush3.msra.mxu0 %v880_v50  ;;  %1499 = vmatpush3.msk.msra.mxu1 %vm59_vm6, %v1612_v25 }
  0x7f   :  { %1500 = vmatprep.mubr.msk.f32.mxu1 %vm1613_vm7, %v1611_v1  ;;  %1511 = vmatprep.subr.mxu0 %v1611_v1 }
  0x80   :  { %1501 = vmatmul.mubr.f32.vlgmr.msra.gmra.mxu1 %v1872_v12  ;;  %1512 = vmatpush3.msra.mxu0 %v887_v9 }
  0x81   :  { %1520 = vmatprep.subr.mxu1 %v1611_v1  ;;  %1513 = vmatprep.subr.mxu0 %v1611_v1 }
  0x82   :  { %1521 = vmatpush3.msk.msra.mxu1 %vm125_vm1, %v1983_v5  ;;  %1514 = vmatpush3.msra.mxu0 %v894_v63  ;;  %vm1285_vm1 = vcmask 265216  }
  0x83   :  { %1522 = vmatprep.subr.mxu1 %v1611_v1  ;;  %1515 = vmatprep.subr.mxu0 %v1611_v1 }
  0x84   :  { %1523 = vmatpush3.msk.msra.mxu1 %vm74_vm2, %v1612_v25  ;;  %1516 = vmatpush3.msra.mxu0 %v901_v23 }
  0x85   :  { %1517 = vmatprep.mubr.msk.f32.mxu0 %vm1613_vm7, %v1611_v1  ;;  %1524 = vmatprep.subr.mxu1 %v1611_v1 }
  0x86   :  { %1518 = vmatmul.mubr.f32.vlgmr.msra.gmra.mxu0 %v1671_v16  ;;  %1525 = vmatpush3.msk.msra.mxu1 %vm71_vm3, %v1612_v25 }
  0x87   :  { %1534 = vmatprep.mubr.msk.f32.mxu1 %vm1613_vm7, %v1611_v1  ;;  %1526 = vmatprep.subr.mxu1 %v1611_v1 }
  0x88   :  { %1527 = vmatpush3.msk.msra.mxu1 %vm68_vm0, %v1612_v25 }
  0x89   :  { %1528 = vmatprep.subr.mxu1 %v1611_v1 }
  0x8a   :  { %1529 = vmatpush3.msk.msra.mxu1 %vm65_vm4, %v1612_v25 }
  0x8b   :  { %1530 = vmatprep.subr.mxu1 %v1611_v1 }
  0x8c   :  { %1531 = vmatpush3.msk.msra.mxu1 %vm62_vm5, %v1612_v25 }
  0x8d   :  { %1532 = vmatprep.subr.mxu1 %v1611_v1 }
  0x8e   :  { %1533 = vmatpush3.msk.msra.mxu1 %vm59_vm6, %v1612_v25 }
  0x8f   :  { %1535 = vmatmul.mubr.f32.vlgmr.msra.gmra.mxu1 %v1671_v16 }
  0xf7   :  { %v220_v6 = vpop.f32.mrf.mxu0 }
  0xf9   :  { %v222_v11 = vpop.f32.mrf.mxu0 }
 0x100   :  { %v362_v13 = vpop.f32.mrf.mxu1 }
 0x101   :  { %v363_v46 = vadd.f32 %v362_v13, %v220_v6 }
 0x102   :  { %v364_v62 = vpop.f32.mrf.mxu1 }
 0x103   :  { %v365_v15 = vadd.f32 %v364_v62, %v222_v11 }
 0x106   :  { %v463_v14 = vpop.f32.mrf.mxu0 }
 0x107   :  { %v464_v49 = vadd.f32 %v463_v14, %v363_v46 }
 0x108   :  { %v465_v12 = vpop.f32.mrf.mxu0 }
 0x109   :  { %v466_v1 = vadd.f32 %v465_v12, %v365_v15 }
 0x110   :  { %v551_v40 = vpop.f32.mrf.mxu1 }
 0x111   :  { %v552_v53 = vadd.f32 %v551_v40, %v464_v49 }
 0x112   :  { %v553_v47 = vpop.f32.mrf.mxu1 }
 0x113   :  { %v554_v54 = vadd.f32 %v553_v47, %v466_v1 }
 0x116   :  { %v665_v44 = vpop.f32.mrf.mxu0 }
 0x117   :  { %v666_v25 = vadd.f32 %v665_v44, %v552_v53 }
 0x118   :  { %v667_v52 = vpop.f32.mrf.mxu0 }
 0x119   :  { %v668_v56 = vadd.f32 %v667_v52, %v554_v54 }
 0x120   :  { %v751_v2 = vpop.f32.mrf.mxu1 }
 0x121   :  { %v752_v57 = vadd.f32 %v751_v2, %v666_v25 }
 0x122   :  { %v753_v16 = vpop.f32.mrf.mxu1 }
 0x123   :  { %v754_v60 = vadd.f32 %v753_v16, %v668_v56 }
 0x125   :  { %v1282_v61 = vcombine.low %v752_v57, %v754_v60 }
 0x127   :  { %1284 = vst [vmem:[#allocation7] sm:$0xff] %v1282_v61  ;;  %v834_v0 = vpop.f32.mrf.mxu0 }
 0x129   :  { %v1451_v3 = vpop.f32.mrf.mxu0 }
 0x130   :  { %v940_v19 = vpop.f32.mrf.mxu1 }
 0x131   :  { %v941_v18 = vadd.f32 %v940_v19, %v834_v0 }
 0x132   :  { %v1468_v20 = vpop.f32.mrf.mxu1 }
 0x136   :  { %v1026_v24 = vpop.f32.mrf.mxu0 }
 0x137   :  { %v1027_v26 = vadd.f32 %v1026_v24, %v941_v18 }
 0x138   :  { %v1485_v5 = vpop.f32.mrf.mxu0 }
 0x140   :  { %v1106_v7 = vpop.f32.mrf.mxu1 }
 0x141   :  { %v1107_v27 = vadd.f32 %v1106_v7, %v1027_v26 }
 0x142   :  { %v1502_v21 = vpop.f32.mrf.mxu1 }
 0x146   :  { %v1198_v22 = vpop.f32.mrf.mxu0 }
 0x147   :  { %v1199_v30 = vadd.f32 %v1198_v22, %v1107_v27 }
 0x148   :  { %v1519_v17 = vpop.f32.mrf.mxu0 }
 0x14f   :  { %v1276_v31 = vpop.f32.mrf.mxu1 }
 0x150   :  { %v1277_v35 = vadd.f32 %v1276_v31, %v1199_v30 }
 0x151   :  { %v1536_v36 = vpop.f32.mrf.mxu1 }
 0x152   :  { %1286 = vst.msk [vmem:[#allocation7 + $0x8] sm:$0xf] %vm1285_vm1, %v1277_v35 }
 0x153   :  { %1594 = shalt.err (!%p1591_p0)
}
 0x154   :  { %1296 = dma.vmem_to_hbm [thread:$0]  %s1294_s1, 192, %s2315_s2, [#allocation4]  }
 0x155   :  { %1607 = dma.done.wait [#allocation4], 192  }
 0x156   :  { %1608 = vsyncadd [#allocation4], 4294967104 }
 0x157   :  { %1300 = vsyncpa [#allocation3], 1 }
 0x158   :  { %1301 = vsyncpa [#allocation6], 1 }
 0x159   :  { %1302 = vsyncpa [#allocation4], 1 }

</bundles_post_ra>
